<compile_context>
chip_gen: v7x
topology: tpu7x:2x2x1
jax: 0.10.0
libtpu: 0.0.40
codegen_flags: <defaults>
</compile_context>

<pallas_src>
import functools

import jax
import jax.numpy as jnp
from jax.experimental import pallas as pl
from jax.experimental.pallas import tpu as pltpu


def _layernorm_kernel(x_ref, a_ref, b_ref, o_ref, *, eps, hidden):
    # a_ref/b_ref: (1, hidden) f32, pre-cast in the wrapper.
    a = a_ref[...]
    b = b_ref[...]

    # x_ref: (tile_rows, hidden)
    x = x_ref[...].astype(jnp.float32)

    # Single pass over x: row sum and row sum-of-squares.
    # TODO(synk): on v7x, if the bundle dump shows the XLU lane reductions
    # saturating before HBM, offload these to the idle MXU via
    # jnp.dot(x, ones((hidden, 128)), preferred_element_type=f32).
    s1 = jnp.sum(x, axis=-1, keepdims=True)          # (tile_rows, 1)
    s2 = jnp.sum(x * x, axis=-1, keepdims=True)      # (tile_rows, 1)

    mean = s1 * (1.0 / hidden)

    # Unbiased variance (ddof=1), matching torch.Tensor.std's default.
    denom = max(hidden - 1, 1)                       # guard hidden == 1
    var = (s2 - s1 * mean) * (1.0 / denom)
    # Guard fp cancellation / garbage rows in the masked tail block.
    var = jnp.maximum(var, 0.0)
    std = jnp.sqrt(var)

    # Per-row reciprocal on the EUP; approx=False keeps the 1e-5 tolerance.
    inv = pl.reciprocal(std + eps, approx=False)     # (tile_rows, 1)

    # a_2 * (x - mean) / (std + eps) + b_2 as one fused streaming expression.
    o_ref[...] = (a * ((x - mean) * inv) + b).astype(o_ref.dtype)


def _vmem_capacity_bytes():
    """Best-effort VMEM capacity query; defaults to 128 MiB (v5e/v6e)."""
    try:
        return int(pltpu.get_tpu_info().vmem_capacity_bytes)
    except Exception:
        return 128 * 1024 * 1024


def _choose_tile_rows(rows, hidden, itemsize, vmem_cap):
    """Bytes-based row-tile sizing with a VMEM ceiling and >=4 grid steps."""
    # Sublane granularity by element width (f32: 8, bf16/f16: 16, int8/fp8: 32).
    if itemsize >= 4:
        granule = 8
    elif itemsize == 2:
        granule = 16
    else:
        granule = 32

    # Target ~4 MiB per input block: large enough to amortize the ~0.35 us
    # per-grid-step overhead and approach HBM roofline, independent of hidden.
    target_block_bytes = 4 << 20
    tile = target_block_bytes // max(hidden * itemsize, 1)

    # VMEM ceiling: double-buffered in+out blocks plus ~3 full-tile f32
    # temporaries (upcast x + streamed intermediates). Budget = half of VMEM.
    bytes_per_row = hidden * (4 * itemsize + 3 * 4)
    tile = min(tile, (vmem_cap // 2) // max(bytes_per_row, 1))

    # Keep at least ~4 grid steps so v7x megacore-shards the parallel axis and
    # the pipeline overlaps DMA with compute (avoid single-step collapse).
    tile = min(tile, max(granule, (rows // 4 // granule) * granule))

    tile = max(granule, (tile // granule) * granule)

    # No point exceeding the (rounded-up) row count.
    rows_rounded = ((rows + granule - 1) // granule) * granule
    return min(tile, rows_rounded)


def _make_io_specs(tile_rows, hidden, deep_buffer):
    """Build x/out BlockSpecs, optionally with 3-deep buffering."""
    idx = lambda i: (i, 0)
    if deep_buffer:
        try:
            return (
                pl.BlockSpec((tile_rows, hidden), idx, pipeline_mode=pl.Buffered(3)),
                pl.BlockSpec((tile_rows, hidden), idx, pipeline_mode=pl.Buffered(3)),
            )
        except Exception:
            pass  # older jax without pipeline_mode kwarg -> default 2-deep
    return (
        pl.BlockSpec((tile_rows, hidden), idx),
        pl.BlockSpec((tile_rows, hidden), idx),
    )


def layer_norm(x, a_2, b_2, eps=1e-6, tile_rows=None):
    """LayerNorm matching the PyTorch reference semantics.

    x:   [batch, slate, hidden]
    a_2: [hidden]   (scale, init ones)
    b_2: [hidden]   (shift, init zeros)
    """
    batch, slate, hidden = x.shape
    rows = batch * slate
    x2d = x.reshape(rows, hidden)

    itemsize = jnp.dtype(x.dtype).itemsize
    vmem_cap = _vmem_capacity_bytes()
    # Scoped VMEM limit with headroom: <= 48 MiB on v7x (64 MiB physical),
    # <= 96 MiB on v5e/v6e (128 MiB physical).
    vmem_limit = max(32 << 20, min(vmem_cap - (16 << 20), 96 << 20))

    if tile_rows is None:
        tile_rows = _choose_tile_rows(rows, hidden, itemsize, vmem_cap)

    # TODO(synk): if production hidden is < 128 (or not a multiple of 128),
    # fold G = 128 // hidden rows into the lane axis in the wrapper and use
    # per-group segmented reductions for a lane-dense output (avoids masked
    # vst.msk partial stores); here hidden equals the full array dim so the
    # block is still legal.

    a2d = a_2.reshape(1, hidden).astype(jnp.float32)
    b2d = b_2.reshape(1, hidden).astype(jnp.float32)

    # No padding: cdiv grid; Pallas masks the partial final block's writeback.
    grid_steps = pl.cdiv(rows, tile_rows)
    grid = (grid_steps,)

    # Deeper buffering only where there is VMEM headroom (not on v7x) and the
    # grid is long enough for it to matter.
    deep_buffer = (
        vmem_cap >= (128 << 20)
        and grid_steps >= 8
        and 3 * 2 * tile_rows * hidden * max(itemsize, 4) < vmem_limit
    )
    x_spec, out_spec = _make_io_specs(tile_rows, hidden, deep_buffer)

    kernel = functools.partial(_layernorm_kernel, eps=eps, hidden=hidden)

    out2d = pl.pallas_call(
        kernel,
        out_shape=jax.ShapeDtypeStruct((rows, hidden), x.dtype),
        grid_spec=pltpu.PrefetchScalarGridSpec(
            num_scalar_prefetch=0,
            grid=grid,
            in_specs=[
                x_spec,
                pl.BlockSpec((1, hidden), lambda i: (0, 0)),
                pl.BlockSpec((1, hidden), lambda i: (0, 0)),
            ],
            out_specs=out_spec,
        ),
        compiler_params=pltpu.CompilerParams(
            dimension_semantics=("parallel",),  # lets v7x shard rows over 2 TCs
            vmem_limit_bytes=int(vmem_limit),
        ),
    )(x2d, a2d, b2d)

    return out2d.reshape(batch, slate, hidden)


if __name__ == "__main__":
    key = jax.random.PRNGKey(0)
    batch, slate, hidden = 2, 8, 32

    x = jax.random.normal(key, (batch, slate, hidden), dtype=jnp.float32)

    # deterministic parameter init, same as the PyTorch module's __init__
    a_2 = jnp.ones((hidden,), dtype=jnp.float32)
    b_2 = jnp.zeros((hidden,), dtype=jnp.float32)

    out = layer_norm(x, a_2, b_2, eps=1e-6)
    out = jax.block_until_ready(out)

    # reference check in plain JAX (unbiased std, eps added to std)
    mean = jnp.mean(x, axis=-1, keepdims=True)
    std = jnp.std(x, axis=-1, keepdims=True, ddof=1)
    ref = a_2 * (x - mean) / (std + 1e-6) + b_2

    assert out.shape == (batch, slate, hidden)
    assert jnp.allclose(out, ref, atol=1e-5, rtol=1e-5)

    print("KERNEL_OK")
</pallas_src>

<mosaic_0001>
module attributes {stable_mosaic.version = 11 : i64} {
  func.func @_layernorm_kernel(%arg0: i32, %arg1: memref<8x32xf32, #tpu.memory_space<vmem>>, %arg2: memref<1x32xf32, #tpu.memory_space<vmem>>, %arg3: memref<1x32xf32, #tpu.memory_space<vmem>>, %arg4: memref<8x32xf32, #tpu.memory_space<vmem>>) attributes {dimension_semantics = [#tpu.dimension_semantics<parallel>], iteration_bounds = array<i64: 2>, scalar_prefetch = 0 : i64, scratch_operands = 0 : i64, tpu.core_type = #tpu.core_type<tc>, window_params = [{transform_indices = @transform_0, window_bounds = array<i64: 8, 32>}, {pipeline_mode = #tpu.pipeline_mode<synchronous>, transform_indices = @transform_1, window_bounds = array<i64: 1, 32>}, {pipeline_mode = #tpu.pipeline_mode<synchronous>, transform_indices = @transform_2, window_bounds = array<i64: 1, 32>}, {transform_indices = @transform_3, window_bounds = array<i64: 8, 32>}]} {
    %c0 = arith.constant 0 : index
    %c0_0 = arith.constant 0 : index
    %0 = vector.load %arg2[%c0, %c0_0] : memref<1x32xf32, #tpu.memory_space<vmem>>, vector<1x32xf32>
    %c0_1 = arith.constant 0 : index
    %c0_2 = arith.constant 0 : index
    %1 = vector.load %arg3[%c0_1, %c0_2] : memref<1x32xf32, #tpu.memory_space<vmem>>, vector<1x32xf32>
    %c0_3 = arith.constant 0 : index
    %c0_4 = arith.constant 0 : index
    %2 = vector.load %arg1[%c0_3, %c0_4] : memref<8x32xf32, #tpu.memory_space<vmem>>, vector<8x32xf32>
    %cst = arith.constant dense<0.000000e+00> : vector<8xf32>
    %3 = vector.multi_reduction <add>, %2, %cst [1] : vector<8x32xf32> to vector<8xf32>
    %4 = vector.shape_cast %3 : vector<8xf32> to vector<8x1xf32>
    %5 = arith.mulf %2, %2 : vector<8x32xf32>
    %cst_5 = arith.constant dense<0.000000e+00> : vector<8xf32>
    %6 = vector.multi_reduction <add>, %5, %cst_5 [1] : vector<8x32xf32> to vector<8xf32>
    %7 = vector.shape_cast %6 : vector<8xf32> to vector<8x1xf32>
    %cst_6 = arith.constant 3.125000e-02 : f32
    %8 = vector.broadcast %cst_6 : f32 to vector<8x1xf32>
    %9 = arith.mulf %4, %8 : vector<8x1xf32>
    %10 = arith.mulf %4, %9 : vector<8x1xf32>
    %11 = arith.subf %7, %10 : vector<8x1xf32>
    %cst_7 = arith.constant 0.0322580636 : f32
    %12 = vector.broadcast %cst_7 : f32 to vector<8x1xf32>
    %13 = arith.mulf %11, %12 : vector<8x1xf32>
    %cst_8 = arith.constant 0.000000e+00 : f32
    %14 = vector.broadcast %cst_8 : f32 to vector<8x1xf32>
    %15 = arith.maximumf %13, %14 : vector<8x1xf32>
    %16 = math.sqrt %15 : vector<8x1xf32>
    %cst_9 = arith.constant 9.99999997E-7 : f32
    %17 = vector.broadcast %cst_9 : f32 to vector<8x1xf32>
    %18 = arith.addf %16, %17 : vector<8x1xf32>
    %19 = tpu.reciprocal %18 : vector<8x1xf32> -> vector<8x1xf32>
    %20 = vector.broadcast %9 : vector<8x1xf32> to vector<8x32xf32>
    %21 = arith.subf %2, %20 : vector<8x32xf32>
    %22 = vector.broadcast %19 : vector<8x1xf32> to vector<8x32xf32>
    %23 = arith.mulf %21, %22 : vector<8x32xf32>
    %24 = vector.broadcast %0 : vector<1x32xf32> to vector<8x32xf32>
    %25 = arith.mulf %24, %23 : vector<8x32xf32>
    %26 = vector.broadcast %1 : vector<1x32xf32> to vector<8x32xf32>
    %27 = arith.addf %25, %26 : vector<8x32xf32>
    %c0_10 = arith.constant 0 : index
    %c0_11 = arith.constant 0 : index
    %28 = vector.load %arg4[%c0_10, %c0_11] : memref<8x32xf32, #tpu.memory_space<vmem>>, vector<8x32xf32>
    tpu.vector_store %arg4[%c0_10, %c0_11], %27 {strides = array<i32>} : memref<8x32xf32, #tpu.memory_space<vmem>>, vector<8x32xf32>,
    return
  }
  func.func @transform_0(%arg0: i32) -> (i32, i32) {
    %c0_i32 = arith.constant 0 : i32
    %c0_i32_0 = arith.constant 0 : i32
    return %arg0, %c0_i32 : i32, i32
  }
  func.func @transform_1(%arg0: i32) -> (i32, i32) {
    %c0_i32 = arith.constant 0 : i32
    %c0_i32_0 = arith.constant 0 : i32
    %c0_i32_1 = arith.constant 0 : i32
    return %c0_i32, %c0_i32_0 : i32, i32
  }
  func.func @transform_2(%arg0: i32) -> (i32, i32) {
    %c0_i32 = arith.constant 0 : i32
    %c0_i32_0 = arith.constant 0 : i32
    %c0_i32_1 = arith.constant 0 : i32
    return %c0_i32, %c0_i32_0 : i32, i32
  }
  func.func @transform_3(%arg0: i32) -> (i32, i32) {
    %c0_i32 = arith.constant 0 : i32
    %c0_i32_0 = arith.constant 0 : i32
    return %arg0, %c0_i32 : i32, i32
  }
}

</mosaic_0001>

<bundles_post_ra>
// kernel: tpu_custom_call.1
= control target key start
LH: loop header
LB: loop body
LE: loop exit
PB: predicated region body
PF: predicated region fallthrough
CT: control target
= control target key end

     0   :  { %8 = vsyncpa [#allocation3], 0  ;;  %s860_s0 = inlined_call_operand.hbm [shape: f32[16,32], index: 0, kind: input, shape index: {}]   ;;  %s861_s1 = inlined_call_operand.hbm [shape: f32[1,32], index: 1, kind: input, shape index: {}]   ;;  %s862_s2 = inlined_call_operand.hbm [shape: f32[1,32], index: 2, kind: input, shape index: {}]   ;;  %s863_s3 = inlined_call_operand.hbm [shape: f32[16,32], index: 3, kind: output, shape index: {}]  }
   0x1   :  { %10 = vsyncpa [#allocation3 + $0x1], 0 }
   0x2   :  { %11 = vsyncpa [#allocation6], 0 }
   0x3   :  { %12 = vsyncpa [#allocation4], 0 }
   0x4   :  { %14 = vsyncpa [#allocation4 + $0x1], 0  ;;  %s627_s12 = smov 0   ;;  %s629_s13 = smov 0  }
   0x5   :  { %s631_s14 = smov 0   ;;  %s633_s15 = smov 0  }
   0x6 LB: > { %s648_s16 = sadd.s32 4294967295, %s601_s15   ;;  %s356_s17 = sadd.s32 4294967294, %s601_s15   ;;  %s601_s15 = sphi %s633_s15, %s883_s15   ;;  %s597_s14 = sphi %s631_s14, %s882_s14   ;;  %s593_s13 = sphi %s629_s13, %s881_s13   ;;  %s589_s12 = sphi %s627_s12, %s880_s12  }
   0x7   : > { %p40_p0 = scmp.ne.s32.totalorder %s593_s13, %s589_s12  ;;  %p864_p1 = scmp.eq.s32.totalorder %s648_s16, 0 }
   0x8   : > { %p112_p3 = scmp.eq.s32.totalorder %s356_s17, 1  ;;  %p357_p5 = scmp.ge.s32.totalorder %s601_s15, 1 }
   0x9   : > { %p657_p4 = por %p864_p1, %p40_p0  ;;  %p119_p7 = scmp.lt.s32.totalorder %s601_s15, 3 }
   0xa   : > { %p662_p6 = por %p112_p3, %p40_p0  ;;  %s603_s21 = smov [#allocation5]  }
   0xb   : > { %s867_s18 = scalar_select %p657_p4, 1, 0 }
   0xc   : > { %s868_s19 = scalar_select %p662_p6, 1, 0 }
   0xd   : > { %p667_p8 = pnand %p357_p5, %p119_p7  ;;  %s132_s22 = sshll.u32 %s603_s21, 4  ;;  %s133_s22 = int_to_ptr.vmem [resolvable:$true] %s132_s22 }
   0xe   : > { %s604_s23 = smov [#allocation7]   ;;  %s683_s26 = sadd.s32 1, %s601_s15  }
   0xf   : > { %s869_s20 = scalar_select %p667_p8, 1, 0 }
  0x10   : > { %p386_p10 = pneg %p667_p8  ;;  %s143_s24 = sshll.u32 %s604_s23, 4  ;;  %s680_s24 = int_to_ptr.vmem [resolvable:$true] %s143_s24 }
  0x11   : > { %s24_s27 = ssub.s32 %s601_s15, %s683_s26  ;;  %s445_s30 = scalar_lea.hbm %s861_s1, 16 }
  0x12   : > { %p676_p11 = pnand %p386_p10, %p864_p1  ;;  %p446_p12 = scmp.ne.s32.totalorder %s861_s1, %s445_s30 }
  0x13   : > { %p452_p5 = scmp.lt.u32.totalorder %s445_s30, %s861_s1 }
  0x14   : > { %p447_p13 = pneg %p676_p11 }
  0x16   : > { %p448_p0 = pnand %p447_p13, %p446_p12 }
  0x18   : > { %p449_p3 = pneg %p448_p0 }
  0x1a   : > { %p454_p7 = pnand %p452_p5, %p449_p3 }
  0x1c   : > { %457 = shalt.err (!%p454_p7)
}
  0x1d   : > { %s458_s8 = scalar_lea.vmem %s133_s22, 16  ;;  %s465_s9 = scalar_lea.vmem %s133_s22, 32 }
  0x1e   : > { %p459_p10 = scmp.ne.s32.totalorder %s133_s22, %s458_s8  ;;  %p466_p2 = scmp.lt.s32.totalorder %s133_s22, %s133_s22 }
  0x1f   : > { %p467_p6 = scmp.lt.s32.totalorder %s465_s9, %s458_s8 }
  0x20   : > { %p461_p9 = pnand %p459_p10, %p447_p13 }
  0x21   : > { %p468_p4 = por %p467_p6, %p466_p2 }
  0x22   : > { %p462_p1 = pneg %p461_p9 }
  0x24   : > { %p469_p8 = pnand %p468_p4, %p462_p1 }
  0x26   : > { %472 = shalt.err (!%p469_p8)
}
  0x27   : > { %389 = dma.hbm_to_vmem [thread:$0]  (!%p676_p11), %s861_s1, 16, %s133_s22, [#allocation6]  }
  0x28   : > { %s473_s23 = scalar_lea.hbm %s862_s2, 16 }
  0x29   : > { %p474_p9 = scmp.ne.s32.totalorder %s862_s2, %s473_s23  ;;  %p480_p4 = scmp.lt.u32.totalorder %s473_s23, %s862_s2 }
  0x2b   : > { %p476_p2 = pnand %p474_p9, %p447_p13 }
  0x2d   : > { %p477_p1 = pneg %p476_p2 }
  0x2f   : > { %p482_p6 = pnand %p480_p4, %p477_p1 }
  0x31   : > { %485 = shalt.err (!%p482_p6)
}
  0x32   : > { %s486_s22 = scalar_lea.vmem %s680_s24, 16  ;;  %s493_s5 = scalar_lea.vmem %s680_s24, 32 }
  0x33   : > { %p487_p8 = scmp.ne.s32.totalorder %s680_s24, %s486_s22  ;;  %p494_p3 = scmp.lt.s32.totalorder %s680_s24, %s680_s24 }
  0x34   : > { %p495_p5 = scmp.lt.s32.totalorder %s493_s5, %s486_s22 }
  0x35   : > { %p489_p12 = pnand %p487_p8, %p447_p13 }
  0x36   : > { %p496_p7 = por %p495_p5, %p494_p3 }
  0x37   : > { %p490_p0 = pneg %p489_p12 }
  0x39   : > { %p497_p10 = pnand %p496_p7, %p490_p0 }
  0x3b   : > { %500 = shalt.err (!%p497_p10)
}
  0x3c   : > { %392 = dma.hbm_to_vmem [thread:$0]  (!%p676_p11), %s862_s2, 16, %s680_s24, [#allocation6]  }
  0x3d   : > { %p25_p13 = scmp.eq.s32.totalorder %s24_s27, 0  ;;  %s27_s8 = sadd.s32 1, %s597_s14 }
  0x3e   : > { %p34_p9 = scmp.ne.s32.totalorder %s597_s14, %s593_s13  ;;  %p35_p2 = scmp.eq.s32.totalorder %s601_s15, 0 }
  0x3f   : > { %s743_s25 = scalar_select %p25_p13, %s597_s14, %s27_s8  }
  0x40   : > { %p36_p1 = por %p35_p2, %p34_p9  ;;  %p871_p4 = scmp.eq.s32.totalorder %s648_s16, 1 }
  0x41   : > { %p403_p8 = scmp.lt.s32.totalorder %s601_s15, 2  ;;  %s154_s10 = sand.u32 1, %s597_s14  }
  0x42   : > { %p747_p6 = por %p871_p4, %p34_p9  ;;  %s361_s11 = sshll.u32 %s154_s10, 3 }
  0x43   : > { %s362_s17 = sshll.u32 %s601_s15, 7  ;;  %s158_s27 = scalar_lea.vmem [#allocation2], %s361_s11 }
  0x44   : > { %s757_s24 = scalar_lea.hbm %s860_s0, %s362_s17  ;;  %s165_s28 = sshll.u32 %s158_s27, 4  ;;  %s759_s28 = int_to_ptr.vmem [resolvable:$true] %s165_s28 }
  0x45   : > { %p761_p11 = pnand %p403_p8, %p36_p1  ;;  %s155_s30 = scalar_lea.sflag [#allocation3], %s154_s10 }
  0x46   : > { %s501_s4 = scalar_lea.hbm %s757_s24, 128  ;;  %s506_s6 = scalar_lea.hbm %s860_s0, 256 }
  0x47   : > { %p502_p12 = scmp.ne.s32.totalorder %s757_s24, %s501_s4  ;;  %p503_p0 = pneg %p761_p11 }
  0x48   : > { %p507_p7 = scmp.lt.u32.totalorder %s757_s24, %s860_s0  ;;  %p508_p10 = scmp.lt.u32.totalorder %s506_s6, %s501_s4 }
  0x49   : > { %p504_p3 = pnand %p503_p0, %p502_p12  ;;  %p510_p9 = scmp.lt.u32.totalorder %s501_s4, %s757_s24 }
  0x4a   : > { %p509_p13 = por %p508_p10, %p507_p7 }
  0x4b   : > { %p505_p5 = pneg %p504_p3 }
  0x4c   : > { %p511_p2 = por %p510_p9, %p509_p13 }
  0x4e   : > { %p512_p1 = pnand %p511_p2, %p505_p5 }
  0x50   : > { %515 = shalt.err (!%p512_p1)
}
  0x51   : > { %s516_s10 = scalar_lea.vmem %s759_s28, 128  ;;  %s605_s11 = smov [#allocation2]  }
  0x52   : > { %p517_p4 = scmp.ne.s32.totalorder %s759_s28, %s516_s10  ;;  %s521_s17 = sshll.u32 %s605_s11, 4  ;;  %s522_s17 = int_to_ptr.vmem [resolvable:$false] %s521_s17 }
  0x53   : > { %s523_s21 = scalar_lea.vmem %s522_s17, 256  ;;  %p524_p3 = scmp.lt.s32.totalorder %s759_s28, %s522_s17 }
  0x54   : > { %p519_p8 = pnand %p517_p4, %p503_p0  ;;  %p525_p7 = scmp.lt.s32.totalorder %s523_s21, %s516_s10 }
  0x56   : > { %p520_p12 = pneg %p519_p8  ;;  %p526_p10 = por %p525_p7, %p524_p3 }
  0x58   : > { %p527_p13 = pnand %p526_p10, %p520_p12 }
  0x5a   : > { %530 = shalt.err (!%p527_p13)
}
  0x5b   : > { %396 = dma.hbm_to_vmem [thread:$0]  (!%p761_p11), %s757_s24, 128, %s759_s28, %s155_s30  }
  0x5c   : > { %p874_p5 = scmp.ne.s32.totalorder %s869_s20, 0 }
  0x5d   : > { %s793_s23 = sand.u32 (!%p874_p5), 1, %s593_s13   ;;  %p875_p0 = scmp.ne.s32.totalorder (!%p874_p5), %s867_s18, 0 }
  0x5e   : > { %174 = sbr.rel (%p874_p5) target bundleno = 307 (0x133), region = 32  ;;  %s364_s27 = sshll.u32 (!%p874_p5), %s793_s23, 3 }
  0x5f   : > { %s177_s4 = scalar_lea.sflag (!%p874_p5), [#allocation3], %s793_s23  ;;  %s180_s22 = scalar_lea.vmem (!%p874_p5), [#allocation2], %s364_s27 }
  0x65   : > { %576 = dma.done.wait (%p875_p0), %s177_s4, 128  }
  0x66   : > { %578 = vsyncadd (%p875_p0), %s177_s4, 4294967168  ;;  %p876_p11 = scmp.eq.s32.totalorder %s648_s16, 0 }
  0x68   : > { %580 = dma.done.wait (%p876_p11), [#allocation6], 32   ;;  %p877_p9 = pmov %p876_p11 }
  0x69   : > { %vm214_vm0 = vcmask 261120   ;;  %v213_v0 = vld [vmem:[%s180_s22] sm:$0xff]  ;;  %v368_v19 = vld [vmem:[#allocation5] ss:$0 sm:$0xff]  ;;  %v369_v21 = vld [vmem:[#allocation7] ss:$0 sm:$0xff] }
  0x6a   : > { %582 = vsyncadd (%p877_p9), [#allocation6], 4294967264  ;;  %v215_v1 = vsel %vm214_vm0, %v213_v0, 0.0  ;;  %v218_v2 = vmul.f32 %v213_v0, %v213_v0  ;;  %s371_s18 = sshll.u32 %s648_s16, 7  ;;  %s210_s20 = scalar_lea.vmem [#allocation8], %s364_s27 }
  0x6b   : > { %216 = vadd.xlane.f32.xlu0 %v215_v1  ;;  %s267_s24 = sshll.u32 %s210_s20, 4  ;;  %s815_s30 = scalar_lea.hbm %s863_s3, %s371_s18  ;;  %s817_s24 = int_to_ptr.vmem [resolvable:$true] %s267_s24 }
  0x6c   : > { %v219_v3 = vsel %vm214_vm0, %v218_v2, 0.0  ;;  %s254_s5 = scalar_lea.sflag [#allocation4], %s793_s23  ;;  %s531_s6 = scalar_lea.vmem %s817_s24, 128 }
  0x6d   : > { %p532_p2 = scmp.ne.s32.totalorder %s817_s24, %s531_s6  ;;  %s606_s16 = smov [#allocation8]  }
  0x6e   : > { %s535_s7 = sshll.u32 %s606_s16, 4  ;;  %s536_s7 = int_to_ptr.vmem [resolvable:$false] %s535_s7 }
  0x6f   : > { %220 = vadd.xlane.f32.xlu0 %v219_v3  ;;  %p533_p1 = pnand %p532_p2, %p747_p6  ;;  %s537_s8 = scalar_lea.vmem %s536_s7, 256 }
  0x70   : > { %p538_p8 = scmp.lt.s32.totalorder %s817_s24, %s536_s7  ;;  %p539_p12 = scmp.lt.s32.totalorder %s537_s8, %s531_s6 }
  0x71   : > { %p534_p4 = pneg %p533_p1 }
  0x72   : > { %p540_p3 = por %p539_p12, %p538_p8 }
  0x74   : > { %p541_p7 = pnand %p540_p3, %p534_p4 }
  0xf8   : > { %v217_v4 = vpop.xlane.xlu0 %216 }
  0xf9   : > { %v222_v5 = vmul.f32 0.03125, %v217_v4 }
  0xfb   : > { %v223_v6 = vmul.f32 %v222_v5, %v217_v4  ;;  %v236_v17 = vsub.f32 %v213_v0, %v222_v5 }
  0xfc   : > { %v221_v7 = vpop.xlane.xlu0 %220 }
  0xfd   : > { %v224_v8 = vsub.f32 %v221_v7, %v223_v6 }
  0xff   : > { %v225_v9 = vmul.f32 0.032258064, %v224_v8 }
 0x101   : > { %v226_v10 = vmax.f32 %v225_v9, 0.0 }
 0x103   : > { %441 = vrsqrt.f32 %v226_v10  ;;  %vm229_vm1 = vcmp.eq.f32.partialorder %v226_v10, inf  ;;  %v232_v13 = vand.u32 2147483648, %v226_v10  ;;  %vm231_vm2 = vcmp.eq.f32.partialorder %v226_v10, 0.0 }
 0x10d   : > { %v442_v11 = vpop.eup %441 }
 0x10e   : > { %v228_v12 = vmul.f32 %v442_v11, %v226_v10 }
 0x110   : > { %v230_v14 = vsel %vm229_vm1, %v226_v10, %v228_v12 }
 0x111   : > { %v233_v15 = vsel %vm231_vm2, %v232_v13, %v230_v14 }
 0x112   : > { %v234_v16 = vadd.f32 1e-06, %v233_v15 }
 0x114   : > { %443 = vrcp.f32 %v234_v16 }
 0x11e   : > { %v444_v18 = vpop.eup %443 }
 0x11f   : > { %v237_v20 = vmul.f32 %v444_v18, %v236_v17 }
 0x121   : > { %v244_v22 = vmul.f32 %v368_v19, %v237_v20 }
 0x123   : > { %v251_v23 = vadd.f32 %v369_v21, %v244_v22 }
 0x125   : > { %252 = vst.msk [vmem:[%s210_s20] sm:$0xff] %vm214_vm0, %v251_v23 }
 0x126   : > { %544 = shalt.err (!%p541_p7)
}
 0x127   : > { %s545_s10 = scalar_lea.hbm %s815_s30, 128  ;;  %s549_s21 = scalar_lea.hbm %s863_s3, 256 }
 0x128   : > { %p546_p10 = scmp.ne.s32.totalorder %s815_s30, %s545_s10  ;;  %p550_p0 = scmp.lt.u32.totalorder %s815_s30, %s863_s3 }
 0x129   : > { %p551_p11 = scmp.lt.u32.totalorder %s549_s21, %s545_s10  ;;  %p553_p2 = scmp.lt.u32.totalorder %s545_s10, %s815_s30 }
 0x12a   : > { %p547_p13 = pnand %p546_p10, %p747_p6 }
 0x12b   : > { %p552_p9 = por %p551_p11, %p550_p0 }
 0x12c   : > { %p548_p5 = pneg %p547_p13 }
 0x12d   : > { %p554_p1 = por %p553_p2, %p552_p9 }
 0x12f   : > { %p555_p4 = pnand %p554_p1, %p548_p5 }
 0x131   : > { %558 = shalt.err (!%p555_p4)
}
 0x132   : > { %384 = dma.vmem_to_hbm [thread:$0]  (%p747_p6), %s817_s24, 128, %s815_s30, %s254_s5  }
 0x133 PF: > { %s279_s4 = sand.u32 1, %s589_s12   ;;  %p878_p8 = scmp.ne.s32.totalorder %s868_s19, 0 }
 0x134   : > { %p879_p12 = scmp.ge.s32.totalorder %s601_s15, 2  ;;  %s280_s22 = scalar_lea.sflag [#allocation4], %s279_s4 }
 0x136   : > { %p398_p3 = pnand %p879_p12, %p878_p8 }
 0x138   : > { %584 = dma.done.wait (!%p398_p3), %s280_s22, 128  }
 0x139   : > { %586 = vsyncadd (!%p398_p3), %s280_s22, 4294967168  ;;  %p17_p7 = scmp.ge.s32.totalorder %s683_s26, 4   ;;  %s880_s12 = smov %s593_s13 }
 0x13a   : > { %s881_s13 = smov %s597_s14  ;;  %s882_s14 = smov %s743_s25 }
 0x13b   : > { %s883_s15 = smov %s683_s26  ;;  %19 = sbr.rel (!%p17_p7) target bundleno = 6 (0x6), region = 85 }
 0x142   :  { %285 = vsyncpa [#allocation3], 1 }
 0x143   :  { %287 = vsyncpa [#allocation3 + $0x1], 1 }
 0x144   :  { %288 = vsyncpa [#allocation6], 1 }
 0x145   :  { %289 = vsyncpa [#allocation4], 1 }
 0x146   :  { %291 = vsyncpa [#allocation4 + $0x1], 1 }

</bundles_post_ra>
